<compile_context>
chip_gen: v5e
topology: v5e:2x2
jax: 0.10.0
libtpu: 0.0.40
codegen_flags: <defaults>
</compile_context>

<pallas_src>
import functools

import jax
import jax.numpy as jnp
from jax.experimental import pallas as pl
from jax.experimental.pallas import tpu as pltpu


# ---------------------------------------------------------------------------
# Pallas kernel: out = 0.5 + A*cos(x) + B*sin(x)   (closed form of the circuit)
# ---------------------------------------------------------------------------
def _qmodel1_kernel(coef_ref, x_ref, out_ref):
    x = x_ref[...]                     # (tm, 128) f32 block of encoded angles
    a = coef_ref[0]                    # A = 0.5*cos(t1)
    b = coef_ref[1]                    # B = -0.5*cos(t0)*sin(t1)
    out_ref[...] = 0.5 + a * jnp.cos(x) + b * jnp.sin(x)


# ---------------------------------------------------------------------------
# Wrapper: flatten -> (rows, 128) lane-dense slab -> pallas_call -> (N, 1)
# ---------------------------------------------------------------------------
@functools.partial(jax.jit, static_argnames=())
def q_model1_forward(x, theta):
    """x: any-shaped f32 array (e.g. NCHW). theta: (3,) f32 [rz0, ry0, rz1].
    Returns qout of shape (x.size, 1), matching the PyTorch Q_Model1 output."""
    flat = jnp.reshape(x, (-1,)).astype(jnp.float32)
    n = flat.shape[0]

    lane = 128
    rows = -(-n // lane)               # ceil(n / 128), static
    n_pad = rows * lane
    if n_pad != n:                     # only pad the small tail (< 128 elems)
        flat = jnp.pad(flat, (0, n_pad - n))
    slab = jnp.reshape(flat, (rows, lane))

    # Large blocks: tm up to 1024 rows (multiple of 8); tiny inputs -> 1 block.
    max_tm = 1024
    if rows <= max_tm:
        tm = rows
        grid = (1,)
    else:
        tm = max_tm
        grid = (pl.cdiv(rows, tm),)    # partial trailing block handled by Pallas

    # Precompute the two circuit coefficients (scalar trig hoisted out of kernel).
    t0 = theta[0].astype(jnp.float32)  # rz0 angle
    t1 = theta[1].astype(jnp.float32)  # ry0 angle (final rz1 never affects <Z>)
    coef = jnp.stack([0.5 * jnp.cos(t1),
                      -0.5 * jnp.cos(t0) * jnp.sin(t1)]).astype(jnp.float32)

    out_slab = pl.pallas_call(
        _qmodel1_kernel,
        out_shape=jax.ShapeDtypeStruct((rows, lane), jnp.float32),
        grid_spec=pltpu.PrefetchScalarGridSpec(
            num_scalar_prefetch=0,
            grid=grid,
            in_specs=[
                pl.BlockSpec(memory_space=pltpu.MemorySpace.SMEM),  # coef (2,)
                pl.BlockSpec((tm, lane), lambda i: (i, 0)),         # x slab
            ],
            out_specs=pl.BlockSpec((tm, lane), lambda i: (i, 0)),
        ),
        compiler_params=pltpu.CompilerParams(
            dimension_semantics=("parallel",)),
    )(coef, slab)

    out_flat = jnp.reshape(out_slab, (-1,))[:n]
    return jnp.reshape(out_flat, (n, 1))


# Plain-JAX reference: explicit 1-qubit statevector simulation of the circuit.
def _reference(x, theta):
    flat = jnp.reshape(x, (-1,)).astype(jnp.float32)
    t0, t1, t2 = theta[0], theta[1], theta[2]
    # Encoder RY(x) on |0>
    a0 = jnp.cos(flat * 0.5).astype(jnp.complex64)
    a1 = jnp.sin(flat * 0.5).astype(jnp.complex64)
    # RZ(t0)
    a0 = a0 * jnp.exp(-0.5j * t0.astype(jnp.complex64))
    a1 = a1 * jnp.exp(0.5j * t0.astype(jnp.complex64))
    # RY(t1)
    c, s = jnp.cos(t1 * 0.5), jnp.sin(t1 * 0.5)
    b0 = c * a0 - s * a1
    b1 = s * a0 + c * a1
    # RZ(t2)
    b0 = b0 * jnp.exp(-0.5j * t2.astype(jnp.complex64))
    b1 = b1 * jnp.exp(0.5j * t2.astype(jnp.complex64))
    z = (jnp.abs(b0) ** 2 - jnp.abs(b1) ** 2).astype(jnp.float32)
    return ((z + 1.0) * 0.5)[:, None]


if __name__ == "__main__":
    key = jax.random.PRNGKey(0)
    kx, kt = jax.random.split(key)

    # Small NCHW input consistent with a conv-style model input.
    x = jax.random.normal(kx, (2, 4, 16, 16), dtype=jnp.float32)

    # Deterministic "trainable" parameters (rz0, ry0, rz1), mimicking
    # torchquantum's uniform init in [-pi, pi).
    theta = jax.random.uniform(
        kt, (3,), dtype=jnp.float32, minval=-jnp.pi, maxval=jnp.pi)

    out = q_model1_forward(x, theta)
    out = jax.block_until_ready(out)

    ref = _reference(x, theta)
    assert out.shape == (2 * 4 * 16 * 16, 1)
    assert jnp.allclose(out, ref, atol=1e-5, rtol=1e-5)

    print("KERNEL_OK")
</pallas_src>

<mosaic_0001>
module attributes {stable_mosaic.version = 11 : i64} {
  func.func @_qmodel1_kernel(%arg0: i32, %arg1: memref<2xf32, #tpu.memory_space<smem>>, %arg2: memref<16x128xf32, #tpu.memory_space<vmem>>, %arg3: memref<16x128xf32, #tpu.memory_space<vmem>>) attributes {dimension_semantics = [#tpu.dimension_semantics<parallel>], iteration_bounds = array<i64: 1>, scalar_prefetch = 0 : i64, scratch_operands = 0 : i64, tpu.core_type = #tpu.core_type<tc>, window_params = [{transform_indices = @transform_0, window_bounds = array<i64: 2>}, {transform_indices = @transform_1, window_bounds = array<i64: 16, 128>}, {transform_indices = @transform_2, window_bounds = array<i64: 16, 128>}]} {
    %c0 = arith.constant 0 : index
    %c0_0 = arith.constant 0 : index
    %0 = vector.load %arg2[%c0, %c0_0] : memref<16x128xf32, #tpu.memory_space<vmem>>, vector<16x128xf32>
    %c0_1 = arith.constant 0 : index
    %1 = memref.load %arg1[%c0_1] : memref<2xf32, #tpu.memory_space<smem>>
    %c1 = arith.constant 1 : index
    %2 = memref.load %arg1[%c1] : memref<2xf32, #tpu.memory_space<smem>>
    %3 = math.cos %0 : vector<16x128xf32>
    %4 = vector.broadcast %1 : f32 to vector<16x128xf32>
    %5 = arith.mulf %4, %3 : vector<16x128xf32>
    %cst = arith.constant 5.000000e-01 : f32
    %6 = vector.broadcast %cst : f32 to vector<16x128xf32>
    %7 = arith.addf %6, %5 : vector<16x128xf32>
    %8 = math.sin %0 : vector<16x128xf32>
    %9 = vector.broadcast %2 : f32 to vector<16x128xf32>
    %10 = arith.mulf %9, %8 : vector<16x128xf32>
    %11 = arith.addf %7, %10 : vector<16x128xf32>
    %c0_2 = arith.constant 0 : index
    %c0_3 = arith.constant 0 : index
    %12 = vector.load %arg3[%c0_2, %c0_3] : memref<16x128xf32, #tpu.memory_space<vmem>>, vector<16x128xf32>
    tpu.vector_store %arg3[%c0_2, %c0_3], %11 {strides = array<i32>} : memref<16x128xf32, #tpu.memory_space<vmem>>, vector<16x128xf32>,
    return
  }
  func.func @transform_0(%arg0: i32) -> i32 {
    %c0_i32 = arith.constant 0 : i32
    %c0_i32_0 = arith.constant 0 : i32
    return %c0_i32 : i32
  }
  func.func @transform_1(%arg0: i32) -> (i32, i32) {
    %c0_i32 = arith.constant 0 : i32
    %c0_i32_0 = arith.constant 0 : i32
    return %arg0, %c0_i32 : i32, i32
  }
  func.func @transform_2(%arg0: i32) -> (i32, i32) {
    %c0_i32 = arith.constant 0 : i32
    %c0_i32_0 = arith.constant 0 : i32
    return %arg0, %c0_i32 : i32, i32
  }
}

</mosaic_0001>

<bundles_post_ra>
// kernel: q_model1_forward.1
= control target key start
LH: loop header
LB: loop body
LE: loop exit
PB: predicated region body
PF: predicated region fallthrough
CT: control target
= control target key end

     0   :  { %7 = vsyncpa [#allocation4], 0  ;;  %s935_s0 = inlined_call_operand.vmem [shape: f32[2], index: 0, kind: input, shape index: {}]   ;;  %s936_s1 = inlined_call_operand.vmem [shape: f32[16,128], index: 1, kind: input, shape index: {}]   ;;  %s937_s2 = inlined_call_operand.hbm [shape: f32[16,128], index: 2, kind: output, shape index: {}]  }
   0x1   :  { %8 = vsyncpa [#allocation3], 0  ;;  %s14_s11 = sshll.u32 %s935_s0, 4  ;;  %s742_s12 = smov [#allocation2]   ;;  %s15_s11 = int_to_ptr.vmem [resolvable:$true] %s14_s11 }
   0x2   :  { %17 = dma.vmem_to_smem %s15_s11, 16, %s742_s12, [#allocation4]  }
   0x3   :  { %738 = dma.done.wait [#allocation4], 16  }
   0x4   :  { %739 = vsyncadd [#allocation4], 4294967280 }
   0x5   :  { %24 = sfence }
   0x6   :  { %v774_v0 = vld [vmem:[%s936_s1] sm:$0xff]  ;;  %v781_v3 = vld [vmem:[%s936_s1 + $0x8] sm:$0xff]  ;;  %v743_v20 = vmov 683565275   ;;  %v744_v22 = vmov 2475754826  }
   0x7   :  { %v29_v1 = vand.u32 2147483647, %v774_v0  ;;  %v32_v2 = vand.u32 2139095040, %v774_v0  ;;  %v186_v7 = vand.u32 2139095040, %v781_v3  ;;  %v183_v9 = vand.u32 2147483647, %v781_v3 }
   0x8   :  { %v745_v24 = vmov 2131351028   ;;  %v746_v26 = vmov 2102212464   ;;  %v747_v28 = vmov 920167782  }
   0x9   :  { %v33_v4 = vshrl.u32 %v32_v2, 23  ;;  %v36_v5 = vand.u32 8388607, %v29_v1  ;;  %v187_v11 = vshrl.u32 %v186_v7, 23  ;;  %v190_v15 = vand.u32 8388607, %v183_v9 }
   0xa   :  { %v748_v37 = vmov 1326507024   ;;  %s905_s0 = sld [smem:[#allocation2]]  ;;  %s750_s17 = smov [#allocation5]  }
   0xb   :  { %v679_v6 = vadd.s32 4294967169, %v33_v4  ;;  %v37_v8 = vor.u32 8388608, %v36_v5  ;;  %v682_v12 = vadd.s32 4294967169, %v187_v11  ;;  %v191_v31 = vor.u32 8388608, %v190_v15  ;;  %s907_s1 = sld [smem:[#allocation2 + $0x1]]  ;;  %s663_s18 = sshll.u32 %s750_s17, 4  ;;  %s664_s18 = int_to_ptr.vmem [resolvable:$true] %s663_s18 }
   0xc   :  { %s665_s21 = sshll.u32 %s937_s2, 4  ;;  %s751_s22 = smov 128   ;;  %s666_s21 = int_to_ptr.hbm [resolvable:$true] %s665_s21 }
   0xd   :  { %v39_v10 = vadd.s32 1, %v679_v6  ;;  %v787_v14 = vshll.u32 %v37_v8, 8  ;;  %v193_v18 = vadd.s32 1, %v682_v12  ;;  %v817_v5 = vshll.u32 %v191_v31, 8  ;;  %s752_s23 = smov 8  }
   0xf   :  { %vm40_vm0 = vcmp.gt.s32.totalorder %v39_v10, 0  ;;  %v78_v30 = vand.u32 65535, %v787_v14  ;;  %vm194_vm3 = vcmp.gt.s32.totalorder %v193_v18, 0  ;;  %v79_v51 = vshrl.u32 %v787_v14, 16 }
  0x10   :  { %v41_v13 = vsel %vm40_vm0, %v39_v10, 0  ;;  %v195_v44 = vsel %vm194_vm3, %v193_v18, 0 }
  0x11   :  { %v42_v16 = vshrl.u32 %v41_v13, 5  ;;  %v43_v17 = vand.u32 31, %v41_v13  ;;  %v197_v55 = vand.u32 31, %v195_v44  ;;  %v809_v58 = vshrl.u32 %v195_v44, 5 }
  0x13   :  { %v44_v19 = vsub.s32 32, %v43_v17  ;;  %v46_v21 = vshll.u32 %v743_v20, %v43_v17  ;;  %v49_v23 = vshll.u32 %v744_v22, %v43_v17  ;;  %v52_v25 = vshll.u32 %v745_v24, %v43_v17 }
  0x14   :  { %v55_v27 = vshll.u32 %v746_v26, %v43_v17  ;;  %v58_v29 = vshll.u32 %v747_v28, %v43_v17  ;;  %vm61_vm1 = vcmp.lt.s32.totalorder %v42_v16, 1  ;;  %vm64_vm2 = vcmp.lt.s32.totalorder %v42_v16, 4 }
  0x15   :  { %v47_v32 = vshrl.u32 %v744_v22, %v44_v19  ;;  %v50_v33 = vshrl.u32 %v745_v24, %v44_v19  ;;  %v53_v34 = vshrl.u32 %v746_v26, %v44_v19  ;;  %v45_v35 = vshrl.u32 %v743_v20, %v44_v19 }
  0x16   :  { %v56_v36 = vshrl.u32 %v747_v28, %v44_v19  ;;  %v59_v38 = vshrl.u32 %v748_v37, %v44_v19  ;;  %vm63_vm4 = vcmp.lt.s32.totalorder %v42_v16, 3  ;;  %vm62_vm5 = vcmp.lt.s32.totalorder %v42_v16, 2 }
  0x17   :  { %v48_v39 = vor.u32 %v47_v32, %v46_v21  ;;  %v51_v40 = vor.u32 %v50_v33, %v49_v23  ;;  %v54_v41 = vor.u32 %v53_v34, %v52_v25  ;;  %v814_v2 = vsub.s32 32, %v197_v55 }
  0x18   :  { %v57_v42 = vor.u32 %v56_v36, %v55_v27  ;;  %v60_v43 = vor.u32 %v59_v38, %v58_v29  ;;  %v200_v4 = vshll.u32 %v743_v20, %v197_v55  ;;  %v203_v10 = vshll.u32 %v744_v22, %v197_v55 }
  0x19   :  { %v66_v45 = vsel %vm64_vm2, %v54_v41, 2102212464  ;;  %v69_v46 = vsel %vm61_vm1, %v48_v39, %v51_v40  ;;  %v73_v47 = vsel %vm61_vm1, %v51_v40, %v54_v41  ;;  %v65_v48 = vsel %vm61_vm1, %v45_v35, %v48_v39 }
  0x1a   :  { %v70_v49 = vsel %vm64_vm2, %v57_v42, 920167782  ;;  %v74_v50 = vsel %vm64_vm2, %v60_v43, 1326507024  ;;  %v67_v52 = vsel %vm63_vm4, %v51_v40, %v66_v45  ;;  %v206_v15 = vshll.u32 %v745_v24, %v197_v55 }
  0x1b   :  { %v71_v53 = vsel %vm63_vm4, %v54_v41, %v70_v49  ;;  %v75_v54 = vsel %vm63_vm4, %v57_v42, %v74_v50  ;;  %v812_v63 = vsel %vm62_vm5, %v65_v48, %v67_v52  ;;  %vm215_vm6 = vcmp.lt.s32.totalorder %v809_v58, 1 }
  0x1c   :  { %v72_v56 = vsel %vm62_vm5, %v69_v46, %v71_v53  ;;  %v76_v57 = vsel %vm62_vm5, %v73_v47, %v75_v54  ;;  %v201_v32 = vshrl.u32 %v744_v22, %v814_v2  ;;  %v204_v35 = vshrl.u32 %v745_v24, %v814_v2 }
  0x1d   :  { %v80_v59 = vand.u32 65535, %v76_v57  ;;  %v81_v60 = vshrl.u32 %v76_v57, 16  ;;  %v102_v61 = vand.u32 65535, %v72_v56  ;;  %v103_v62 = vshrl.u32 %v72_v56, 16 }
  0x1e   :  { %v829_v42 = vor.u32 %v201_v32, %v200_v4  ;;  %v832_v44 = vor.u32 %v204_v35, %v203_v10  ;;  %v207_v45 = vshrl.u32 %v746_v26, %v814_v2  ;;  %v209_v46 = vshll.u32 %v746_v26, %v197_v55 }
  0x1f   :  { %v82_v6 = vmul.u32 %v80_v59, %v78_v30  ;;  %v83_v7 = vmul.u32 %v81_v60, %v78_v30  ;;  %v84_v8 = vmul.u32 %v80_v59, %v79_v51  ;;  %v104_v11 = vmul.u32 %v102_v61, %v78_v30 }
  0x20   :  { %v105_v12 = vmul.u32 %v103_v62, %v78_v30  ;;  %v106_v13 = vmul.u32 %v102_v61, %v79_v51  ;;  %v85_v17 = vmul.u32 %v81_v60, %v79_v51  ;;  %v107_v19 = vmul.u32 %v103_v62, %v79_v51 }
  0x21   :  { %v86_v16 = vshll.u32 %v83_v7, 16  ;;  %v88_v18 = vshll.u32 %v84_v8, 16  ;;  %v87_v21 = vshrl.u32 %v83_v7, 16  ;;  %v89_v23 = vshrl.u32 %v84_v8, 16 }
  0x22   :  { %v108_v25 = vshll.u32 %v105_v12, 16  ;;  %v110_v27 = vshll.u32 %v106_v13, 16  ;;  %v109_v31 = vshrl.u32 %v105_v12, 16  ;;  %v749_v30 = vmov 0  }
  0x23   :  { %vm90_vm7 = vc.u32 %v82_v6, %v86_v16  ;;  %v92_v29 = vadd.s32 %v86_v16, %v82_v6  ;;  %v111_v38 = vshrl.u32 %v106_v13, 16  ;;  %v210_v47 = vshrl.u32 %v747_v28, %v814_v2 }
  0x24   :  { %v91_v33 = vsel %vm90_vm7, 1, %v749_v30  ;;  %vm112_vm8 = vc.u32 %v104_v11, %v108_v25  ;;  %v114_v34 = vadd.s32 %v108_v25, %v104_v11  ;;  %v212_v48 = vshll.u32 %v747_v28, %v197_v55 }
  0x25   :  { %v93_v36 = vadd.s32 %v91_v33, %v85_v17  ;;  %vm94_vm9 = vc.u32 %v92_v29, %v88_v18  ;;  %v113_v39 = vsel %vm112_vm8, 1, %v749_v30  ;;  %v208_v51 = vor.u32 %v207_v45, %v206_v15 }
  0x26   :  { %v95_v40 = vsel %vm94_vm9, 1, %v749_v30  ;;  %v115_v41 = vadd.s32 %v113_v39, %v107_v19  ;;  %vm116_vm10 = vc.u32 %v114_v34, %v110_v27  ;;  %v840_v50 = vadd.s32 %v114_v34, %v110_v27 }
  0x27   :  { %v97_v22 = vadd.s32 %v95_v40, %v93_v36  ;;  %v117_v43 = vsel %vm116_vm10, 1, %v749_v30  ;;  %v213_v52 = vshrl.u32 %v748_v37, %v814_v2  ;;  %v211_v54 = vor.u32 %v210_v47, %v209_v46 }
  0x28   :  { %v119_v24 = vadd.s32 %v117_v43, %v115_v41  ;;  %vm217_vm11 = vcmp.lt.s32.totalorder %v809_v58, 3  ;;  %vm218_vm12 = vcmp.lt.s32.totalorder %v809_v58, 4  ;;  %vm216_vm13 = vcmp.lt.s32.totalorder %v809_v58, 2 }
  0x29   :  { %v98_v49 = vadd.s32 %v97_v22, %v87_v21  ;;  %v214_v26 = vor.u32 %v213_v52, %v212_v48  ;;  %v223_v28 = vsel %vm215_vm6, %v829_v42, %v832_v44  ;;  %v224_v37 = vsel %vm218_vm12, %v211_v54, 920167782 }
  0x2a   :  { %v120_v53 = vadd.s32 %v119_v24, %v109_v31  ;;  %v232_v55 = vand.u32 65535, %v817_v5  ;;  %v122_v59 = vmul.u32 %v787_v14, %v812_v63  ;;  %v225_v60 = vsel %vm217_vm11, %v208_v51, %v224_v37 }
  0x2b   :  { %v846_v56 = vadd.s32 %v98_v49, %v89_v23  ;;  %v233_v61 = vshrl.u32 %v817_v5, 16  ;;  %v226_v4 = vsel %vm216_vm13, %v223_v28, %v225_v60  ;;  %v227_v6 = vsel %vm215_vm6, %v832_v44, %v208_v51 }
  0x2c   :  { %v121_v57 = vadd.s32 %v120_v53, %v111_v38  ;;  %v228_v7 = vsel %vm218_vm12, %v214_v26, 1326507024  ;;  %v256_v63 = vand.u32 65535, %v226_v4  ;;  %v257_v8 = vshrl.u32 %v226_v4, 16 }
  0x2d   :  { %vm124_vm14 = vc.u32 %v846_v56, %v840_v50  ;;  %v229_v14 = vsel %vm217_vm11, %v211_v54, %v228_v7  ;;  %v199_v34 = vshrl.u32 %v743_v20, %v814_v2  ;;  %v220_v39 = vsel %vm218_vm12, %v208_v51, 2102212464 }
  0x2e   :  { %v125_v62 = vadd.s32 1, %v121_v57  ;;  %v230_v11 = vsel %vm216_vm13, %v227_v6, %v229_v14  ;;  %v258_v17 = vmul.u32 %v256_v63, %v232_v55  ;;  %v259_v16 = vmul.u32 %v257_v8, %v232_v55 }
  0x2f   :  { %v234_v13 = vand.u32 65535, %v230_v11  ;;  %v235_v15 = vshrl.u32 %v230_v11, 16  ;;  %v260_v18 = vmul.u32 %v256_v63, %v233_v61  ;;  %v261_v35 = vmul.u32 %v257_v8, %v233_v61 }
  0x30   :  { %v126_v10 = vsel %vm124_vm14, %v125_v62, %v121_v57  ;;  %v262_v27 = vshll.u32 %v259_v16, 16  ;;  %v263_v22 = vshrl.u32 %v259_v16, 16  ;;  %v219_v53 = vsel %vm215_vm6, %v199_v34, %v829_v42 }
  0x31   :  { %v127_v12 = vadd.s32 %v126_v10, %v122_v59  ;;  %v236_v21 = vmul.u32 %v234_v13, %v232_v55  ;;  %v237_v23 = vmul.u32 %v235_v15, %v232_v55  ;;  %v238_v25 = vmul.u32 %v234_v13, %v233_v61 }
  0x32   :  { %v239_v31 = vmul.u32 %v235_v15, %v233_v61  ;;  %v264_v36 = vshll.u32 %v260_v18, 16  ;;  %vm266_vm15 = vc.u32 %v258_v17, %v262_v27  ;;  %v268_v45 = vadd.s32 %v262_v27, %v258_v17 }
  0x33   :  { %v128_v19 = vadd.s32 536870912, %v127_v12  ;;  %v240_v32 = vshll.u32 %v237_v23, 16  ;;  %v242_v33 = vshll.u32 %v238_v25, 16  ;;  %v267_v43 = vsel %vm266_vm15, 1, %v749_v30 }
  0x34   :  { %v241_v46 = vshrl.u32 %v237_v23, 16  ;;  %v243_v20 = vshrl.u32 %v238_v25, 16  ;;  %v269_v48 = vadd.s32 %v267_v43, %v261_v35  ;;  %vm270_vm2 = vc.u32 %v268_v45, %v264_v36 }
  0x35   :  { %v874_v29 = vshrl.u32 %v128_v19, 30  ;;  %vm244_vm0 = vc.u32 %v236_v21, %v240_v32  ;;  %v246_v40 = vadd.s32 %v240_v32, %v236_v21  ;;  %v271_v52 = vsel %vm270_vm2, 1, %v749_v30 }
  0x36   :  { %v245_v41 = vsel %vm244_vm0, 1, %v749_v30  ;;  %v221_v54 = vsel %vm217_vm11, %v832_v44, %v220_v39  ;;  %v265_v26 = vshrl.u32 %v260_v18, 16  ;;  %v273_v57 = vadd.s32 %v271_v52, %v269_v48 }
  0x37   :  { %v130_v38 = vshll.u32 %v874_v29, 30  ;;  %v247_v47 = vadd.s32 %v245_v41, %v239_v31  ;;  %vm248_vm1 = vc.u32 %v246_v40, %v242_v33  ;;  %v272_v59 = vadd.s32 %v268_v45, %v264_v36 }
  0x38   :  { %v249_v2 = vsel %vm248_vm1, 1, %v749_v30  ;;  %v274_v60 = vadd.s32 %v273_v57, %v263_v22  ;;  %v222_v61 = vsel %vm216_vm13, %v219_v53, %v221_v54  ;;  %v123_v42 = vadd.s32 %v840_v50, %v846_v56 }
  0x39   :  { %v131_v24 = vsub.s32 %v127_v12, %v130_v38  ;;  %v251_v51 = vadd.s32 %v249_v2, %v247_v47  ;;  %v276_v6 = vmul.u32 %v817_v5, %v222_v61  ;;  %vm31_vm6 = vcmp.lt.s32.totalorder %v774_v0, 0 }
  0x3a   :  { %v275_v4 = vadd.s32 %v274_v60, %v265_v26  ;;  %v153_v23 = vsub.s32 4, %v874_v29  ;;  %vm30_vm7 = vcmp.le.f32.partialorder %v29_v1, 0.7853982  ;;  %vm185_vm13 = vcmp.lt.s32.totalorder %v781_v3, 0 }
  0x3b   :  { %vm132_vm3 = vcmp.lt.s32.totalorder %v131_v24, 0  ;;  %v133_v49 = vsub.s32 0, %v131_v24  ;;  %v252_v37 = vadd.s32 %v251_v51, %v241_v46  ;;  %vm172_vm1 = vweird.f32 %v774_v0 }
  0x3c   :  { %v279_v44 = vadd.s32 1, %v275_v4  ;;  %v154_v33 = vsel %vm31_vm6, %v153_v23, %v874_v29  ;;  %vm914_vm2 = vcmp.le.f32.partialorder %v183_v9, 0.7853982 }
  0x3d   :  { %v134_v28 = vsel %vm132_vm3, %v133_v49, %v131_v24  ;;  %v253_v62 = vadd.s32 %v252_v37, %v243_v20  ;;  %v156_v39 = vsel %vm30_vm7, 0, %v154_v33 }
  0x3e   :  { %v135_v55 = vclz %v134_v28  ;;  %v486_v20 = vadd.s32 3, %v156_v39  ;;  %v173_v53 = vand.u32 3, %v156_v39 }
  0x3f   :  { %vm278_vm5 = vc.u32 %v253_v62, %v272_v59  ;;  %v277_v22 = vadd.s32 %v272_v59, %v253_v62 }
  0x40   :  { %v680_v30 = vadd.s32 4294967294, %v135_v55  ;;  %v280_v10 = vsel %vm278_vm5, %v279_v44, %v275_v4  ;;  %v487_v57 = vand.u32 3, %v486_v20  ;;  %vm178_vm10 = vcmp.eq.s32.totalorder %v173_v53, 2 }
  0x41   :  { %v281_v58 = vadd.s32 %v280_v10, %v276_v6  ;;  %vm174_vm12 = vcmp.lt.s32.totalorder %v173_v53, 2  ;;  %vm175_vm14 = vcmp.eq.s32.totalorder %v173_v53, 0 }
  0x42   :  { %vm681_vm4 = vcmp.lt.s32.totalorder %v680_v30, 0  ;;  %vm492_vm11 = vcmp.eq.s32.totalorder %v487_v57, 2  ;;  %vm489_vm15 = vcmp.eq.s32.totalorder %v487_v57, 0  ;;  %vm488_vm0 = vcmp.lt.s32.totalorder %v487_v57, 2 }
  0x43   :  { %v138_v7 = vsel %vm681_vm4, 0, %v680_v30  ;;  %v282_v17 = vadd.s32 536870912, %v281_v58 }
  0x44   :  { %v139_v14 = vsub.s32 32, %v138_v7  ;;  %v140_v63 = vshll.u32 %v131_v24, %v138_v7  ;;  %v143_v8 = vsub.s32 4294967266, %v138_v7 }
  0x45   :  { %v896_v19 = vshrl.u32 %v282_v17, 30 }
  0x46   :  { %v141_v11 = vshrl.u32 %v123_v42, %v139_v14  ;;  %v144_v12 = vadd.s32 127, %v143_v8 }
  0x47   :  { %v284_v5 = vshll.u32 %v896_v19, 30  ;;  %v307_v6 = vsub.s32 4, %v896_v19 }
  0x48   :  { %v142_v13 = vor.u32 %v141_v11, %v140_v63  ;;  %v145_v15 = vshll.u32 %v144_v12, 23  ;;  %v337_v11 = vstv %s905_s0 }
  0x49   :  { %v285_v21 = vsub.s32 %v281_v58, %v284_v5  ;;  %v652_v58 = vstv %s907_s1 }
  0x4a   :  { %v146_v16 = vor.u32 4788187, %v145_v15  ;;  %v149_v18 = vcvt.s32.f32 %v142_v13 }
  0x4b   :  { %vm286_vm8 = vcmp.lt.s32.totalorder %v285_v21, 0  ;;  %v287_v27 = vsub.s32 0, %v285_v21 }
  0x4c   :  { %v147_v50 = vand.u32 2147483647, %v146_v16 }
  0x4d   :  { %v288_v32 = vsel %vm286_vm8, %v287_v27, %v285_v21 }
  0x4e   :  { %v150_v56 = vmul.f32 %v149_v18, %v147_v50  ;;  %v289_v35 = vclz %v288_v32 }
  0x50   :  { %v151_v25 = vxor.u32 2147483648, %v150_v56  ;;  %v683_v38 = vadd.s32 4294967294, %v289_v35 }
  0x52   :  { %v152_v31 = vsel %vm31_vm6, %v151_v25, %v150_v56  ;;  %vm684_vm9 = vcmp.lt.s32.totalorder %v683_v38, 0 }
  0x53   :  { %v155_v34 = vsel %vm30_vm7, %v774_v0, %v152_v31  ;;  %v292_v1 = vsel %vm684_vm9, 0, %v683_v38  ;;  %v308_v0 = vsel %vm185_vm13, %v307_v6, %v896_v19  ;;  %vm326_vm9 = vweird.f32 %v781_v3 }
  0x54   :  { %v157_v36 = vmul.f32 %v155_v34, %v155_v34  ;;  %v293_v24 = vsub.s32 32, %v292_v1  ;;  %v294_v46 = vshll.u32 %v285_v21, %v292_v1  ;;  %v297_v47 = vsub.s32 4294967266, %v292_v1 }
  0x55   :  { %v310_v21 = vsel %vm914_vm2, 0, %v308_v0 }
  0x56   :  { %v158_v40 = vmul.f32 -0.001358992, %v157_v36  ;;  %v165_v41 = vmul.f32 -0.00019511016, %v157_v36  ;;  %v295_v29 = vshrl.u32 %v277_v22, %v293_v24  ;;  %v298_v49 = vadd.s32 127, %v297_v47 }
  0x57   :  { %v327_v39 = vand.u32 3, %v310_v21 }
  0x58   :  { %v159_v43 = vadd.f32 0.041655596, %v158_v40  ;;  %v166_v45 = vadd.f32 0.008332121, %v165_v41  ;;  %v296_v54 = vor.u32 %v295_v29, %v294_v46  ;;  %v299_v26 = vshll.u32 %v298_v49, 23 }
  0x59   :  { %vm332_vm3 = vcmp.eq.s32.totalorder %v327_v39, 2  ;;  %vm328_vm5 = vcmp.lt.s32.totalorder %v327_v39, 2  ;;  %vm329_vm6 = vcmp.eq.s32.totalorder %v327_v39, 0 }
  0x5a   :  { %v160_v2 = vmul.f32 %v159_v43, %v157_v36  ;;  %v167_v48 = vmul.f32 %v166_v45, %v157_v36  ;;  %v300_v55 = vor.u32 4788187, %v299_v26  ;;  %v303_v59 = vcvt.s32.f32 %v296_v54 }
  0x5c   :  { %v161_v51 = vadd.f32 -0.4999988, %v160_v2  ;;  %v168_v52 = vadd.f32 -0.16666654, %v167_v48  ;;  %v301_v62 = vand.u32 2147483647, %v300_v55 }
  0x5e   :  { %v162_v28 = vmul.f32 %v161_v51, %v157_v36  ;;  %v169_v37 = vmul.f32 %v168_v52, %v157_v36  ;;  %v304_v42 = vmul.f32 %v303_v59, %v301_v62 }
  0x60   :  { %v163_v60 = vadd.f32 1.0, %v162_v28  ;;  %v170_v61 = vadd.f32 1.0, %v169_v37  ;;  %v305_v8 = vxor.u32 2147483648, %v304_v42 }
  0x62   :  { %v171_v30 = vmul.f32 %v170_v61, %v155_v34  ;;  %v179_v4 = vxor.u32 2147483648, %v163_v60  ;;  %v306_v15 = vsel %vm185_vm13, %v305_v8, %v304_v42  ;;  %v641_v34 = vadd.s32 3, %v310_v21 }
  0x63   :  { %v309_v9 = vsel %vm914_vm2, %v781_v3, %v306_v15 }
  0x64   :  { %v176_v44 = vxor.u32 2147483648, %v171_v30  ;;  %v180_v7 = vsel %vm178_vm10, %v179_v4, %v171_v30  ;;  %v494_v14 = vsel %vm492_vm11, %v179_v4, %v171_v30  ;;  %v311_v50 = vmul.f32 %v309_v9, %v309_v9 }
  0x65   :  { %v642_v40 = vand.u32 3, %v641_v34 }
  0x66   :  { %v177_v10 = vsel %vm175_vm14, %v163_v60, %v176_v44  ;;  %v491_v12 = vsel %vm489_vm15, %v163_v60, %v176_v44  ;;  %v312_v23 = vmul.f32 -0.001358992, %v311_v50  ;;  %v319_v25 = vmul.f32 -0.00019511016, %v311_v50 }
  0x67   :  { %v181_v13 = vsel %vm174_vm12, %v177_v10, %v180_v7  ;;  %v495_v17 = vsel %vm488_vm0, %v491_v12, %v494_v14  ;;  %vm647_vm4 = vcmp.eq.s32.totalorder %v642_v40, 2  ;;  %vm644_vm7 = vcmp.eq.s32.totalorder %v642_v40, 0 }
  0x68   :  { %v182_v16 = vsel %vm172_vm1, nan, %v181_v13  ;;  %v496_v18 = vsel %vm172_vm1, nan, %v495_v17  ;;  %v313_v31 = vadd.f32 0.041655596, %v312_v23  ;;  %v320_v32 = vadd.f32 0.008332121, %v319_v25 }
  0x69   :  { %v338_v5 = vmul.f32 %v337_v11, %v182_v16  ;;  %v653_v56 = vmul.f32 %v652_v58, %v496_v18  ;;  %vm643_vm8 = vcmp.lt.s32.totalorder %v642_v40, 2 }
  0x6a   :  { %v314_v35 = vmul.f32 %v313_v31, %v311_v50  ;;  %v321_v19 = vmul.f32 %v320_v32, %v311_v50 }
  0x6b   :  { %v340_v27 = vadd.f32 0.5, %v338_v5 }
  0x6c   :  { %v315_v36 = vadd.f32 -0.4999988, %v314_v35  ;;  %v322_v38 = vadd.f32 -0.16666654, %v321_v19 }
  0x6d   :  { %v655_v33 = vadd.f32 %v653_v56, %v340_v27 }
  0x6e   :  { %v316_v41 = vmul.f32 %v315_v36, %v311_v50  ;;  %v323_v22 = vmul.f32 %v322_v38, %v311_v50 }
  0x6f   :  { %657 = vst [vmem:[#allocation5] sm:$0xff] %v655_v33 }
  0x70   :  { %v317_v43 = vadd.f32 1.0, %v316_v41  ;;  %v324_v45 = vadd.f32 1.0, %v323_v22 }
  0x72   :  { %v325_v1 = vmul.f32 %v324_v45, %v309_v9  ;;  %v333_v24 = vxor.u32 2147483648, %v317_v43 }
  0x74   :  { %v330_v46 = vxor.u32 2147483648, %v325_v1  ;;  %v334_v47 = vsel %vm332_vm3, %v333_v24, %v325_v1  ;;  %v649_v20 = vsel %vm647_vm4, %v333_v24, %v325_v1 }
  0x76   :  { %v331_v2 = vsel %vm329_vm6, %v317_v43, %v330_v46  ;;  %v646_v48 = vsel %vm644_vm7, %v317_v43, %v330_v46 }
  0x77   :  { %v335_v29 = vsel %vm328_vm5, %v331_v2, %v334_v47  ;;  %v650_v49 = vsel %vm643_vm8, %v646_v48, %v649_v20 }
  0x78   :  { %v336_v51 = vsel %vm326_vm9, nan, %v335_v29  ;;  %v651_v52 = vsel %vm326_vm9, nan, %v650_v49 }
  0x79   :  { %v339_v53 = vmul.f32 %v337_v11, %v336_v51  ;;  %v654_v54 = vmul.f32 %v652_v58, %v651_v52 }
  0x7b   :  { %v341_v26 = vadd.f32 0.5, %v339_v53 }
  0x7d   :  { %v656_v57 = vadd.f32 %v654_v54, %v341_v26 }
  0x7f   :  { %658 = vst [vmem:[#allocation5 + $0x8] sm:$0xff] %v656_v57 }
  0x80   :  { %671 = dma.vmem_to_hbm [thread:$0]  %s664_s18, 256, %s666_s21, [#allocation3], %s751_s22, %s751_s22, %s752_s23  }
  0x81   :  { %740 = dma.done.wait [#allocation3], 256  }
  0x82   :  { %741 = vsyncadd [#allocation3], 4294967040 }
  0x83   :  { %676 = vsyncpa [#allocation3], 1 }
  0x84   :  { %677 = vsyncpa [#allocation4], 1 }

</bundles_post_ra>
